<compile_context>
chip_gen: v6e
topology: v6e:2x2x1
jax: 0.10.0
libtpu: 0.0.40
codegen_flags: <defaults>
</compile_context>

<pallas_src>
import jax
import jax.numpy as jnp
from jax.experimental import pallas as pl
from jax.experimental.pallas import tpu as pltpu


# ----------------------------- kernel ----------------------------------------------
def _clip_embed_kernel(x_ref, w_ref, addend_ref, o_ref):
    # x_ref:      [NP+1, K]  bf16   (row 0 is zeros -> class-token row)
    # w_ref:      [K, D]     bf16   (flattened conv weight, constant block)
    # addend_ref: [NP+1, D]  f32    (position table with class embedding folded into row 0)
    # o_ref:      [NP+1, D]  f32
    acc = jnp.dot(x_ref[...], w_ref[...], preferred_element_type=jnp.float32)
    o_ref[...] = acc + addend_ref[...]


# ----------------------------- wrapper ---------------------------------------------
def feature_extractor_patch(pixel_values, patch_weight, class_embedding,
                            position_embedding, *, patch_size):
    """pixel_values [B,C,H,W] f32, patch_weight [D,C,P,P] f32 (Conv2d, bias=False),
    class_embedding [D] f32, position_embedding [NP+1, D] f32. Returns [B, NP+1, D] f32."""
    B, C, H, W = pixel_values.shape
    P = patch_size
    GH, GW = H // P, W // P
    NP = GH * GW
    NP1 = NP + 1
    D = patch_weight.shape[0]
    K = C * P * P

    # im2col: one-time layout transform in XLA (feature dim last, order (c, i, j) to
    # match Conv2d weight flattening). Cast to bf16 -> halves the patch DMA traffic.
    patches = pixel_values.reshape(B, C, GH, P, GW, P)
    patches = patches.transpose(0, 2, 4, 1, 3, 5).reshape(B, NP, K).astype(jnp.bfloat16)
    # Prepend a zero row per batch: the class-token row comes out of the same matmul.
    patches_ext = jnp.pad(patches, ((0, 0), (1, 0), (0, 0)))          # [B, NP+1, K]

    # Flattened conv weight for the MXU, stored bf16.
    w_mat = patch_weight.reshape(D, K).T.astype(jnp.bfloat16)         # [K, D]
    # Fold class embedding into position row 0:  out[0] = 0 @ W + (pos[0] + cls).
    addend = position_embedding.astype(jnp.float32).at[0].add(
        class_embedding.astype(jnp.float32))                          # [NP+1, D]

    return pl.pallas_call(
        _clip_embed_kernel,
        out_shape=jax.ShapeDtypeStruct((B, NP1, D), jnp.float32),
        grid=(B,),
        in_specs=[
            pl.BlockSpec((None, NP1, K), lambda b: (b, 0, 0)),   # per-batch patch block
            pl.BlockSpec((K, D), lambda b: (0, 0)),              # constant weight block
            pl.BlockSpec((NP1, D), lambda b: (0, 0)),            # constant pos+cls block
        ],
        out_specs=pl.BlockSpec((None, NP1, D), lambda b: (b, 0, 0)),
        compiler_params=pltpu.CompilerParams(dimension_semantics=("parallel",)),
    )(patches_ext, w_mat, addend)


# ----------------------------- main -------------------------------------------------
if __name__ == "__main__":
    key = jax.random.PRNGKey(0)
    k1, k2, k3, k4 = jax.random.split(key, 4)

    # Small shapes consistent with the module: 32x32 image, 8x8 patches, embed_dim 128.
    B, C, IMG, P = 2, 3, 32, 8
    D = 128
    GH = GW = IMG // P
    NP = GH * GW
    NP1 = NP + 1
    K = C * P * P

    pixel_values = jax.random.normal(k1, (B, C, IMG, IMG), jnp.float32)
    patch_weight = jax.random.normal(k2, (D, C, P, P), jnp.float32) * 0.02
    class_embedding = jax.random.normal(k3, (D,), jnp.float32) * 0.02
    position_embedding = jax.random.normal(k4, (NP1, D), jnp.float32) * 0.02

    out = feature_extractor_patch(pixel_values, patch_weight, class_embedding,
                                  position_embedding, patch_size=P)
    out = jax.block_until_ready(out)

    # Pure-JAX f32 reference (matches the torch forward).
    patches_ref = pixel_values.reshape(B, C, GH, P, GW, P) \
                              .transpose(0, 2, 4, 1, 3, 5).reshape(B, NP, K)
    patch_embeds = jnp.einsum("bpk,kd->bpd", patches_ref, patch_weight.reshape(D, K).T)
    ref = jnp.concatenate(
        [jnp.broadcast_to(class_embedding, (B, 1, D)), patch_embeds], axis=1
    ) + position_embedding[None]

    assert out.shape == (B, NP1, D)
    assert float(jnp.max(jnp.abs(out - ref))) < 0.1   # bf16-matmul tolerance
    print("KERNEL_OK")
</pallas_src>

<mosaic_0001>
module attributes {stable_mosaic.version = 11 : i64} {
  func.func @_clip_embed_kernel(%arg0: i32, %arg1: memref<1x17x192xbf16, #tpu.memory_space<vmem>>, %arg2: memref<192x128xbf16, #tpu.memory_space<vmem>>, %arg3: memref<17x128xf32, #tpu.memory_space<vmem>>, %arg4: memref<1x17x128xf32, #tpu.memory_space<vmem>>) attributes {dimension_semantics = [#tpu.dimension_semantics<parallel>], iteration_bounds = array<i64: 2>, scalar_prefetch = 0 : i64, scratch_operands = 0 : i64, tpu.core_type = #tpu.core_type<tc>, window_params = [{transform_indices = @transform_0, window_bounds = array<i64: 1, 17, 192>}, {pipeline_mode = #tpu.pipeline_mode<synchronous>, transform_indices = @transform_1, window_bounds = array<i64: 192, 128>}, {pipeline_mode = #tpu.pipeline_mode<synchronous>, transform_indices = @transform_2, window_bounds = array<i64: 17, 128>}, {transform_indices = @transform_3, window_bounds = array<i64: 1, 17, 128>}]} {
    %c0 = arith.constant 0 : index
    %c0_0 = arith.constant 0 : index
    %c0_1 = arith.constant 0 : index
    %0 = vector.load %arg1[%c0, %c0_0, %c0_1] : memref<1x17x192xbf16, #tpu.memory_space<vmem>>, vector<1x17x192xbf16>
    %1 = vector.shape_cast %0 : vector<1x17x192xbf16> to vector<17x192xbf16>
    %c0_2 = arith.constant 0 : index
    %c0_3 = arith.constant 0 : index
    %2 = vector.load %arg2[%c0_2, %c0_3] : memref<192x128xbf16, #tpu.memory_space<vmem>>, vector<192x128xbf16>
    %cst = arith.constant dense<0.000000e+00> : vector<17x128xf32>
    %3 = tpu.matmul %1, %2, %cst {dimension_numbers = #tpu.dot_dimension_numbers<[1], [0], [0], [1], [0, 0, 1, 1], [], []>} : vector<17x192xbf16>, vector<192x128xbf16>, vector<17x128xf32> -> vector<17x128xf32>
    %c0_4 = arith.constant 0 : index
    %c0_5 = arith.constant 0 : index
    %4 = vector.load %arg3[%c0_4, %c0_5] : memref<17x128xf32, #tpu.memory_space<vmem>>, vector<17x128xf32>
    %5 = arith.addf %3, %4 : vector<17x128xf32>
    %c0_6 = arith.constant 0 : index
    %c0_7 = arith.constant 0 : index
    %c0_8 = arith.constant 0 : index
    %6 = vector.load %arg4[%c0_6, %c0_7, %c0_8] : memref<1x17x128xf32, #tpu.memory_space<vmem>>, vector<1x17x128xf32>
    %7 = vector.shape_cast %6 : vector<1x17x128xf32> to vector<17x128xf32>
    %8 = vector.shape_cast %5 : vector<17x128xf32> to vector<1x17x128xf32>
    tpu.vector_store %arg4[%c0_6, %c0_7, %c0_8], %8 {strides = array<i32>} : memref<1x17x128xf32, #tpu.memory_space<vmem>>, vector<1x17x128xf32>,
    return
  }
  func.func @transform_0(%arg0: i32) -> (i32, i32, i32) {
    %c0_i32 = arith.constant 0 : i32
    %c0_i32_0 = arith.constant 0 : i32
    %c0_i32_1 = arith.constant 0 : i32
    return %arg0, %c0_i32, %c0_i32_0 : i32, i32, i32
  }
  func.func @transform_1(%arg0: i32) -> (i32, i32) {
    %c0_i32 = arith.constant 0 : i32
    %c0_i32_0 = arith.constant 0 : i32
    %c0_i32_1 = arith.constant 0 : i32
    return %c0_i32, %c0_i32_0 : i32, i32
  }
  func.func @transform_2(%arg0: i32) -> (i32, i32) {
    %c0_i32 = arith.constant 0 : i32
    %c0_i32_0 = arith.constant 0 : i32
    %c0_i32_1 = arith.constant 0 : i32
    return %c0_i32, %c0_i32_0 : i32, i32
  }
  func.func @transform_3(%arg0: i32) -> (i32, i32, i32) {
    %c0_i32 = arith.constant 0 : i32
    %c0_i32_0 = arith.constant 0 : i32
    %c0_i32_1 = arith.constant 0 : i32
    return %arg0, %c0_i32, %c0_i32_0 : i32, i32, i32
  }
}

</mosaic_0001>

<bundles_post_ra>
// kernel: tpu_custom_call.1
= control target key start
LH: loop header
LB: loop body
LE: loop exit
PB: predicated region body
PF: predicated region fallthrough
CT: control target
= control target key end

     0   :  { %8 = vsyncpa [#allocation3], 0  ;;  %s584_s12 = smov 0   ;;  %s668_s0 = inlined_call_operand.vmem [shape: bf16[2,17,192], index: 0, kind: input, shape index: {}]   ;;  %s669_s1 = inlined_call_operand.hbm [shape: bf16[192,128], index: 1, kind: input, shape index: {}]   ;;  %s670_s2 = inlined_call_operand.vmem [shape: f32[17,128], index: 2, kind: input, shape index: {}]   ;;  %s671_s3 = inlined_call_operand.vmem [shape: f32[2,17,128], index: 3, kind: output, shape index: {}]  }
   0x1 LB: > { %s590_s13 = sadd.s32 4294967295, %s558_s12   ;;  %p431_p0 = scmp.ge.s32.totalorder %s558_s12, 1  ;;  %s558_s12 = sphi %s584_s12, %s14_s12  }
   0x2   : > { %p113_p1 = scmp.lt.s32.totalorder %s558_s12, 3  ;;  %s560_s14 = smov [#allocation2]  }
   0x3   : > { %s125_s15 = sshll.u32 %s560_s14, 4  ;;  %p491_p3 = scmp.eq.s32.totalorder %s590_s13, 0  ;;  %s126_s15 = int_to_ptr.vmem [resolvable:$true] %s125_s15 }
   0x4   : > { %p594_p2 = pnand %p431_p0, %p113_p1  ;;  %s533_s17 = scalar_lea.vmem %s126_s15, 1536 }
   0x5   : > { %p534_p7 = scmp.ne.s32.totalorder %s126_s15, %s533_s17  ;;  %p541_p10 = scmp.lt.s32.totalorder %s126_s15, %s126_s15 }
   0x6   : > { %p487_p4 = pneg %p594_p2  ;;  %p542_p11 = scmp.lt.s32.totalorder %s533_s17, %s533_s17 }
   0x8   : > { %p488_p5 = pnand %p491_p3, %p487_p4  ;;  %p543_p12 = por %p542_p11, %p541_p10 }
   0xa   : > { %p524_p6 = pneg %p488_p5 }
   0xc   : > { %p536_p8 = pnand %p534_p7, %p524_p6 }
   0xe   : > { %p537_p9 = pneg %p536_p8 }
  0x10   : > { %p544_p13 = pnand %p543_p12, %p537_p9 }
  0x12   : > { %547 = shalt.err (!%p544_p13)
}
  0x13   : > { %s561_s18 = smov 64   ;;  %s562_s19 = smov 4  }
  0x14   : > { %490 = dma.hbm_to_vmem [thread:$0]  (!%p488_p5), %s669_s1, 1536, %s126_s15, [#allocation3], %s561_s18, %s561_s18, %s562_s19  }
  0x15   : > { %152 = sbr.rel (%p594_p2) target bundleno = 276 (0x114), region = 32 }
  0x1a   : > { %553 = dma.done.wait (%p491_p3), [#allocation3], 1536  }
  0x1b   : > { %555 = vsyncadd (%p491_p3), [#allocation3], 4294965760  ;;  %v563_v0 = vmov 0   ;;  %p176_p0 = scmp.lt.s32.totalorder %s590_s13, 1  ;;  %v505_v1 = vld [vmem:[#allocation2 + $0x38] sm:$0xff]   ;;  %v506_v2 = vld [vmem:[#allocation2 + $0x30] sm:$0xff]  }
  0x1c   : > { %311 = vmatprep.subr.bf16.mxu0 %v563_v0  ;;  %458 = vmatprep.subr.bf16.mxu1 %v563_v0  ;;  %v507_v3 = vld [vmem:[#allocation2 + $0x28] sm:$0xff]   ;;  %v508_v4 = vld [vmem:[#allocation2 + $0x20] sm:$0xff]   ;;  %vm304_vm0 = vcmask 523264   ;;  %v509_v7 = vld [vmem:[#allocation2 + $0x18] sm:$0xff]  }
  0x1d   : > { %312 = vmatpush1.bf16.msra.mxu0 %v505_v1  ;;  %470 = vmatpush1.bf16.msra.mxu1 %v505_v1  ;;  %s674_s13 = smov (!%p176_p0, %s590_s13), 1  ;;  %v510_v9 = vld [vmem:[#allocation2 + $0x10] sm:$0xff]   ;;  %v511_v10 = vld [vmem:[#allocation2 + $0x8] sm:$0xff]   ;;  %v512_v11 = vld [vmem:[#allocation2] sm:$0xff]  }
  0x1e   : > { %313 = vmatprep.subr.bf16.mxu0 %v563_v0  ;;  %459 = vmatprep.subr.bf16.mxu1 %v563_v0  ;;  %s482_s22 = smul.u32 24, %s674_s13  ;;  %v513_v12 = vld [vmem:[#allocation2 + $0x58] sm:$0xff]   ;;  %v514_v13 = vld [vmem:[#allocation2 + $0x50] sm:$0xff]   ;;  %v515_v14 = vld [vmem:[#allocation2 + $0x48] sm:$0xff]  }
  0x1f   : > { %v516_v15 = vld [vmem:[#allocation2 + $0x40] sm:$0xff]   ;;  %v216_v19 = vld [vmem:[%s670_s2 + $0x10] sm:$0x1]  ;;  %v215_v26 = vld [vmem:[%s670_s2 + $0x8] sm:$0xff] }
  0x20   : > { %s628_s25 = scalar_lea.vmem %s668_s0, %s482_s22  ;;  %v214_v18 = vld [vmem:[%s670_s2] sm:$0xff]  ;;  %s185_s5 = scalar_lea.vmem %s671_s3, %s482_s22 }
  0x21   : > { %314 = vmatpush1.bf16.msra.mxu0 %v506_v2  ;;  %471 = vmatpush1.bf16.msra.mxu1 %v506_v2  ;;  %v519_v5 = vld [vmem:[%s628_s25 + $0x4] ss:$8 sps:$4 sm:$0xff]   ;;  %v189_v6 = vld [vmem:[%s628_s25 + $0x10] sm:$0x11]  ;;  %v517_v16 = vld [vmem:[%s628_s25] ss:$8 sps:$4 sm:$0xff]  }
  0x22   : > { %315 = vmatprep.subr.bf16.mxu0 %v563_v0  ;;  %460 = vmatprep.subr.bf16.mxu1 %v563_v0  ;;  %v441_v8 = vcombine.high %v189_v6, %v189_v6  ;;  %v440_v17 = vcombine.low %v189_v6, %v189_v6 }
  0x23   : > { %454 = vmatprep.mubr.msk.bf16.mxu0 %vm304_vm0, %v519_v5 }
  0x24   : > { %455 = vmatprep.mubr.msk.bf16.mxu1 %vm304_vm0, %v441_v8 }
  0x25   : > { %316 = vmatpush1.bf16.msra.mxu0 %v507_v3  ;;  %472 = vmatpush1.bf16.msra.mxu1 %v507_v3 }
  0x26   : > { %317 = vmatprep.subr.bf16.mxu0 %v563_v0  ;;  %461 = vmatprep.subr.bf16.mxu1 %v563_v0 }
  0x29   : > { %318 = vmatpush1.bf16.msra.mxu0 %v508_v4  ;;  %473 = vmatpush1.bf16.msra.mxu1 %v508_v4 }
  0x2a   : > { %319 = vmatprep.subr.bf16.mxu0 %v563_v0  ;;  %462 = vmatprep.subr.bf16.mxu1 %v563_v0 }
  0x2d   : > { %320 = vmatpush1.bf16.msra.mxu0 %v509_v7  ;;  %474 = vmatpush1.bf16.msra.mxu1 %v509_v7 }
  0x2e   : > { %321 = vmatprep.subr.bf16.mxu0 %v563_v0  ;;  %463 = vmatprep.subr.bf16.mxu1 %v563_v0 }
  0x31   : > { %322 = vmatpush1.bf16.msra.mxu0 %v510_v9  ;;  %475 = vmatpush1.bf16.msra.mxu1 %v510_v9 }
  0x32   : > { %323 = vmatprep.subr.bf16.mxu0 %v563_v0  ;;  %464 = vmatprep.subr.bf16.mxu1 %v563_v0 }
  0x35   : > { %324 = vmatpush1.bf16.msra.mxu0 %v511_v10  ;;  %476 = vmatpush1.bf16.msra.mxu1 %v511_v10 }
  0x36   : > { %325 = vmatprep.subr.bf16.mxu0 %v563_v0  ;;  %465 = vmatprep.subr.bf16.mxu1 %v563_v0 }
  0x39   : > { %326 = vmatpush1.bf16.msra.mxu0 %v512_v11  ;;  %477 = vmatpush1.bf16.msra.mxu1 %v512_v11 }
  0x3a   : > { %335 = vmatprep.subr.bf16.mxu0 %v563_v0  ;;  %466 = vmatprep.subr.bf16.mxu1 %v563_v0 }
  0x3d   : > { %336 = vmatpush2.bf16.msra.mxu0 %v513_v12  ;;  %478 = vmatpush2.bf16.msra.mxu1 %v513_v12 }
  0x3e   : > { %337 = vmatprep.subr.bf16.mxu0 %v563_v0  ;;  %467 = vmatprep.subr.bf16.mxu1 %v563_v0 }
  0x41   : > { %338 = vmatpush2.bf16.msra.mxu0 %v514_v13  ;;  %479 = vmatpush2.bf16.msra.mxu1 %v514_v13 }
  0x42   : > { %339 = vmatprep.subr.bf16.mxu0 %v563_v0  ;;  %468 = vmatprep.subr.bf16.mxu1 %v563_v0 }
  0x45   : > { %340 = vmatpush2.bf16.msra.mxu0 %v515_v14  ;;  %480 = vmatpush2.bf16.msra.mxu1 %v515_v14 }
  0x46   : > { %341 = vmatprep.subr.bf16.mxu0 %v563_v0  ;;  %469 = vmatprep.subr.bf16.mxu1 %v563_v0 }
  0x49   : > { %342 = vmatpush2.bf16.msra.mxu0 %v516_v15  ;;  %481 = vmatpush2.bf16.msra.mxu1 %v516_v15 }
  0x4c   : > { %344 = vmatmul.mubr.bf16.vlgmr.msra.gmra.mxu0 %v517_v16  ;;  %352 = vmatmul.mubr.bf16.vlgmr.msra.gmra.mxu1 %v440_v17 }
 0x10c   : > { %v345_v20 = vpop.f32.mrf.mxu0  ;;  %v353_v21 = vpop.f32.mrf.mxu1 }
 0x10d   : > { %v346_v22 = vadd.f32 %v345_v20, %v214_v18  ;;  %v354_v23 = vadd.f32 %v353_v21, %v216_v19 }
 0x10e   : > { %v347_v24 = vpop.f32.mrf.mxu0  ;;  %v355_v25 = vpop.f32.mrf.mxu1 }
 0x10f   : > { %359 = vst [vmem:[%s185_s5] sm:$0xff] %v346_v22  ;;  %361 = vst [vmem:[%s185_s5 + $0x10] sm:$0x1] %v354_v23 }
 0x110   : > { %v348_v27 = vpop.f32.mrf.mxu0  ;;  %v356_v28 = vpop.f32.mrf.mxu1 }
 0x111   : > { %v349_v29 = vadd.f32 %v348_v27, %v215_v26 }
 0x112   : > { %v350_v30 = vpop.f32.mrf.mxu0  ;;  %v357_v31 = vpop.f32.mrf.mxu1 }
 0x113   : > { %360 = vst [vmem:[%s185_s5 + $0x8] sm:$0xff] %v349_v29 }
 0x114 PF: > { %s14_s12 = sadd.s32 1, %s558_s12  }
 0x115   : > { %p11_p1 = scmp.ge.s32.totalorder %s14_s12, 4  }
 0x117   :  { %13 = sbr.rel (!%p11_p1) target bundleno = 1 (0x1), region = 67 }
 0x11c   :  { %383 = vsyncpa [#allocation3], 1 }
 0x11d   :  { %385 = vsyncpa [#allocation3 + $0x1], 1 }

</bundles_post_ra>
